<compile_context>
chip_gen: v6e
topology: v6e:2x2x1
jax: 0.10.0
libtpu: 0.0.40
codegen_flags: <defaults>
</compile_context>

<pallas_src>
import functools
import math

import jax
import jax.numpy as jnp
from jax.experimental import pallas as pl
from jax.experimental.pallas import tpu as pltpu

_LANES = 128
_LOG2E = 1.4426950408889634


def _round_up(a, b):
    return -(-a // b) * b


def _kan_kernel(c_ref, s_ref, ws_ref, b_ref, x_ref, o_ref, *, num_kernels):
    # c_ref  : SMEM (K,)          centers
    # s_ref  : SMEM (K,)          -log2(e) / (2 * widths^2)   (host precomputed)
    # ws_ref : SMEM (K,)          weights.sum(axis=0)         (folded matmul)
    # b_ref  : VMEM (1|tm, 128)   lane-patterned bias slab
    # x_ref  : VMEM (tm, 128)     flattened inputs
    # o_ref  : VMEM (tm, 128)     outputs
    x = x_ref[...].astype(jnp.float32)
    # Accumulator initialised from the bias: drops the zeros-init and the
    # trailing "+ bias" (2 VALU ops per vreg).
    acc = jnp.broadcast_to(b_ref[...], x.shape)
    # K is small and static: fully unrolled loop of VPU mul/add + EUP exp2.
    for k in range(num_kernels):
        d = x - c_ref[k]
        acc = acc + ws_ref[k] * jnp.exp2(d * d * s_ref[k])
    o_ref[...] = acc.astype(o_ref.dtype)


@functools.partial(jax.jit, static_argnames=("tile_rows",))
def kan_layer_forward(x, weights, bias, centers, widths, *, tile_rows=2048):
    """x: (batch, input_dim). Returns (batch, input_dim) (== output_dim)."""
    B, D = x.shape
    O, K = weights.shape
    assert D == O, "KANLayer broadcast requires input_dim == output_dim"

    # I/O dtype follows x (bf16 stays bf16 -> halves HBM traffic on v5e);
    # all in-kernel arithmetic is f32.
    io_dtype = x.dtype if x.dtype in (jnp.float32, jnp.bfloat16) else jnp.float32
    x = x.astype(io_dtype)

    bias32 = bias.astype(jnp.float32)
    c = centers.astype(jnp.float32).reshape(K)
    # Fold 1/(2 w^2) and log2(e): exp(-d^2/(2w^2)) == exp2(d^2 * s).
    s = (-_LOG2E / (2.0 * widths.astype(jnp.float32) ** 2)).reshape(K)
    ws = weights.astype(jnp.float32).sum(axis=0).reshape(K)

    # ------------------------------ row geometry -----------------------------
    M = B * D
    rows_needed = -(-M // _LANES)                     # ceil(M / 128)
    P = D // math.gcd(D, _LANES)                      # bias lane-pattern period (rows)
    align = (8 * P) // math.gcd(8, P)                 # tm must be a multiple of this
    tm_cap = _round_up(max(tile_rows, align), align)  # per-block row cap
    cap_chunks = tm_cap // align

    # Minimum block count so both v7x TensorCores get work ("parallel" axis);
    # harmless on single-TC v5e/v6e (per grid step overhead ~0.35 us).
    n_chunks_needed = -(-rows_needed // align)
    if n_chunks_needed >= 8:
        min_blocks = 4
    elif n_chunks_needed >= 2:
        min_blocks = 2
    else:
        min_blocks = 1

    num_blocks = None
    tm = None
    rows = None
    if (M % _LANES == 0) and (rows_needed % align == 0):
        # Zero-copy path: pick a block count that divides the existing row
        # count exactly, so neither an input pad nor an output slice pass is
        # needed (both are pure HBM overhead).
        n_chunks = rows_needed // align
        max_blocks = max(8, 2 * (-(-n_chunks // cap_chunks)))
        for d in range(min_blocks, n_chunks + 1):
            if n_chunks % d == 0 and (n_chunks // d) <= cap_chunks:
                if d <= max_blocks:
                    num_blocks = d
                    tm = (n_chunks // d) * align
                    rows = rows_needed
                break

    if num_blocks is None:
        # Padded path (ragged sizes): round rows up so blocks tile exactly.
        blocks_for_cap = -(-rows_needed // tm_cap)
        num_blocks = max(min_blocks, blocks_for_cap)
        if num_blocks > 1 and num_blocks % 2:
            num_blocks += 1                      # even split across v7x's 2 TCs
        tm = _round_up(-(-rows_needed // num_blocks), align)
        rows = tm * num_blocks

    m_pad = rows * _LANES

    # ------------------------------- bias slab --------------------------------
    # Flat index m maps to bias[m % D]; the per-row lane pattern repeats every
    # P rows.  P == 1 (D | 128): a single (1,128) row, broadcast in-kernel.
    # P > 1: build a (tm,128) slab host-side (tm % P == 0); with a constant
    # index_map it is DMA'd into VMEM exactly once.
    bias_rows = 1 if P == 1 else tm
    lane_bias = jnp.tile(bias32, (bias_rows * _LANES) // D).reshape(bias_rows, _LANES)

    # --------------------------------- input ----------------------------------
    x_flat = x.reshape(-1)
    if m_pad != M:
        x_flat = jnp.pad(x_flat, (0, m_pad - M))
    x2 = x_flat.reshape(rows, _LANES)

    itemsize = jnp.dtype(io_dtype).itemsize
    cost = pl.CostEstimate(
        flops=5 * K * m_pad,
        transcendentals=K * m_pad,
        bytes_accessed=2 * itemsize * m_pad + 4 * bias_rows * _LANES,
    )
    smem_spec = pl.BlockSpec(memory_space=pltpu.MemorySpace.SMEM)

    out2 = pl.pallas_call(
        functools.partial(_kan_kernel, num_kernels=K),
        out_shape=jax.ShapeDtypeStruct((rows, _LANES), io_dtype),
        grid_spec=pltpu.PrefetchScalarGridSpec(
            num_scalar_prefetch=0,
            grid=(num_blocks,),
            in_specs=[
                smem_spec,                                            # centers
                smem_spec,                                            # -log2e/(2w^2)
                smem_spec,                                            # weights.sum(0)
                pl.BlockSpec((bias_rows, _LANES), lambda i: (0, 0)),  # bias slab
                pl.BlockSpec((tm, _LANES), lambda i: (i, 0)),         # x tiles
            ],
            out_specs=pl.BlockSpec((tm, _LANES), lambda i: (i, 0)),
        ),
        compiler_params=pltpu.CompilerParams(
            dimension_semantics=("parallel",)),
        cost_estimate=cost,
    )(c, s, ws, lane_bias, x2)

    if m_pad != M:
        out = out2.reshape(-1)[:M].reshape(B, D)
    else:
        out = out2.reshape(B, D)
    return out


def _reference(x, weights, bias, centers, widths):
    # Pure-JAX transcription of the PyTorch forward.
    kernels = jnp.exp(-(x[..., None] - centers) ** 2 / (2.0 * widths ** 2))
    activation = jnp.sum(jnp.matmul(kernels, weights.T), axis=-1) + bias
    return activation


if __name__ == "__main__":
    # Module config: input_dim == output_dim (required by the forward's
    # broadcast), num_kernels = 10 (default).
    input_dim = 16
    output_dim = 16
    num_kernels = 10

    key = jax.random.PRNGKey(0)
    k_w, k_b, k_x1, k_x2 = jax.random.split(key, 4)

    # Deterministic parameters mirroring __init__ (bias made nonzero so the
    # in-kernel bias path is actually exercised).
    weights = jax.random.normal(k_w, (output_dim, num_kernels), dtype=jnp.float32)
    bias = 0.1 * jax.random.normal(k_b, (output_dim,), dtype=jnp.float32)
    centers = jnp.linspace(-1.0, 1.0, num_kernels, dtype=jnp.float32)
    widths = jnp.ones((num_kernels,), dtype=jnp.float32) * 0.1

    # Case 1: ragged size (batch*input_dim = 160) -> pad/slice path, 1 block.
    x1 = jax.random.normal(k_x1, (10, input_dim), dtype=jnp.float32)
    out1 = jax.block_until_ready(kan_layer_forward(x1, weights, bias, centers, widths))
    ref1 = _reference(x1, weights, bias, centers, widths)
    assert out1.shape == ref1.shape == (10, input_dim)
    assert jnp.allclose(out1, ref1, atol=1e-4, rtol=1e-4), "mismatch vs reference (ragged)"

    # Case 2: aligned size (batch*input_dim = 4096) -> zero-copy path, 2-block
    # grid so both v7x TensorCores get work.
    x2 = jax.random.normal(k_x2, (256, input_dim), dtype=jnp.float32)
    out2 = jax.block_until_ready(kan_layer_forward(x2, weights, bias, centers, widths))
    ref2 = _reference(x2, weights, bias, centers, widths)
    assert out2.shape == ref2.shape == (256, input_dim)
    assert jnp.allclose(out2, ref2, atol=1e-4, rtol=1e-4), "mismatch vs reference (aligned)"

    print("KERNEL_OK")
</pallas_src>

<mosaic_0001>
module attributes {stable_mosaic.version = 11 : i64} {
  func.func @_kan_kernel(%arg0: i32, %arg1: memref<10xf32, #tpu.memory_space<smem>>, %arg2: memref<10xf32, #tpu.memory_space<smem>>, %arg3: memref<10xf32, #tpu.memory_space<smem>>, %arg4: memref<1x128xf32, #tpu.memory_space<vmem>>, %arg5: memref<8x128xf32, #tpu.memory_space<vmem>>, %arg6: memref<8x128xf32, #tpu.memory_space<vmem>>) attributes {dimension_semantics = [#tpu.dimension_semantics<parallel>], iteration_bounds = array<i64: 1>, scalar_prefetch = 0 : i64, scratch_operands = 0 : i64, tpu.core_type = #tpu.core_type<tc>, window_params = [{transform_indices = @transform_0, window_bounds = array<i64: 10>}, {transform_indices = @transform_1, window_bounds = array<i64: 10>}, {transform_indices = @transform_2, window_bounds = array<i64: 10>}, {pipeline_mode = #tpu.pipeline_mode<synchronous>, transform_indices = @transform_3, window_bounds = array<i64: 1, 128>}, {transform_indices = @transform_4, window_bounds = array<i64: 8, 128>}, {transform_indices = @transform_5, window_bounds = array<i64: 8, 128>}]} {
    %c0 = arith.constant 0 : index
    %c0_0 = arith.constant 0 : index
    %0 = vector.load %arg5[%c0, %c0_0] : memref<8x128xf32, #tpu.memory_space<vmem>>, vector<8x128xf32>
    %c0_1 = arith.constant 0 : index
    %c0_2 = arith.constant 0 : index
    %1 = vector.load %arg4[%c0_1, %c0_2] : memref<1x128xf32, #tpu.memory_space<vmem>>, vector<1x128xf32>
    %2 = vector.shape_cast %1 : vector<1x128xf32> to vector<1x128xf32>
    %3 = vector.broadcast %2 : vector<1x128xf32> to vector<8x128xf32>
    %c0_3 = arith.constant 0 : index
    %4 = memref.load %arg1[%c0_3] : memref<10xf32, #tpu.memory_space<smem>>
    %5 = vector.broadcast %4 : f32 to vector<8x128xf32>
    %6 = arith.subf %0, %5 : vector<8x128xf32>
    %c0_4 = arith.constant 0 : index
    %7 = memref.load %arg3[%c0_4] : memref<10xf32, #tpu.memory_space<smem>>
    %8 = arith.mulf %6, %6 : vector<8x128xf32>
    %c0_5 = arith.constant 0 : index
    %9 = memref.load %arg2[%c0_5] : memref<10xf32, #tpu.memory_space<smem>>
    %10 = vector.broadcast %9 : f32 to vector<8x128xf32>
    %11 = arith.mulf %8, %10 : vector<8x128xf32>
    %12 = math.exp2 %11 : vector<8x128xf32>
    %13 = vector.broadcast %7 : f32 to vector<8x128xf32>
    %14 = arith.mulf %13, %12 : vector<8x128xf32>
    %15 = arith.addf %3, %14 : vector<8x128xf32>
    %c1 = arith.constant 1 : index
    %16 = memref.load %arg1[%c1] : memref<10xf32, #tpu.memory_space<smem>>
    %17 = vector.broadcast %16 : f32 to vector<8x128xf32>
    %18 = arith.subf %0, %17 : vector<8x128xf32>
    %c1_6 = arith.constant 1 : index
    %19 = memref.load %arg3[%c1_6] : memref<10xf32, #tpu.memory_space<smem>>
    %20 = arith.mulf %18, %18 : vector<8x128xf32>
    %c1_7 = arith.constant 1 : index
    %21 = memref.load %arg2[%c1_7] : memref<10xf32, #tpu.memory_space<smem>>
    %22 = vector.broadcast %21 : f32 to vector<8x128xf32>
    %23 = arith.mulf %20, %22 : vector<8x128xf32>
    %24 = math.exp2 %23 : vector<8x128xf32>
    %25 = vector.broadcast %19 : f32 to vector<8x128xf32>
    %26 = arith.mulf %25, %24 : vector<8x128xf32>
    %27 = arith.addf %15, %26 : vector<8x128xf32>
    %c2 = arith.constant 2 : index
    %28 = memref.load %arg1[%c2] : memref<10xf32, #tpu.memory_space<smem>>
    %29 = vector.broadcast %28 : f32 to vector<8x128xf32>
    %30 = arith.subf %0, %29 : vector<8x128xf32>
    %c2_8 = arith.constant 2 : index
    %31 = memref.load %arg3[%c2_8] : memref<10xf32, #tpu.memory_space<smem>>
    %32 = arith.mulf %30, %30 : vector<8x128xf32>
    %c2_9 = arith.constant 2 : index
    %33 = memref.load %arg2[%c2_9] : memref<10xf32, #tpu.memory_space<smem>>
    %34 = vector.broadcast %33 : f32 to vector<8x128xf32>
    %35 = arith.mulf %32, %34 : vector<8x128xf32>
    %36 = math.exp2 %35 : vector<8x128xf32>
    %37 = vector.broadcast %31 : f32 to vector<8x128xf32>
    %38 = arith.mulf %37, %36 : vector<8x128xf32>
    %39 = arith.addf %27, %38 : vector<8x128xf32>
    %c3 = arith.constant 3 : index
    %40 = memref.load %arg1[%c3] : memref<10xf32, #tpu.memory_space<smem>>
    %41 = vector.broadcast %40 : f32 to vector<8x128xf32>
    %42 = arith.subf %0, %41 : vector<8x128xf32>
    %c3_10 = arith.constant 3 : index
    %43 = memref.load %arg3[%c3_10] : memref<10xf32, #tpu.memory_space<smem>>
    %44 = arith.mulf %42, %42 : vector<8x128xf32>
    %c3_11 = arith.constant 3 : index
    %45 = memref.load %arg2[%c3_11] : memref<10xf32, #tpu.memory_space<smem>>
    %46 = vector.broadcast %45 : f32 to vector<8x128xf32>
    %47 = arith.mulf %44, %46 : vector<8x128xf32>
    %48 = math.exp2 %47 : vector<8x128xf32>
    %49 = vector.broadcast %43 : f32 to vector<8x128xf32>
    %50 = arith.mulf %49, %48 : vector<8x128xf32>
    %51 = arith.addf %39, %50 : vector<8x128xf32>
    %c4 = arith.constant 4 : index
    %52 = memref.load %arg1[%c4] : memref<10xf32, #tpu.memory_space<smem>>
    %53 = vector.broadcast %52 : f32 to vector<8x128xf32>
    %54 = arith.subf %0, %53 : vector<8x128xf32>
    %c4_12 = arith.constant 4 : index
    %55 = memref.load %arg3[%c4_12] : memref<10xf32, #tpu.memory_space<smem>>
    %56 = arith.mulf %54, %54 : vector<8x128xf32>
    %c4_13 = arith.constant 4 : index
    %57 = memref.load %arg2[%c4_13] : memref<10xf32, #tpu.memory_space<smem>>
    %58 = vector.broadcast %57 : f32 to vector<8x128xf32>
    %59 = arith.mulf %56, %58 : vector<8x128xf32>
    %60 = math.exp2 %59 : vector<8x128xf32>
    %61 = vector.broadcast %55 : f32 to vector<8x128xf32>
    %62 = arith.mulf %61, %60 : vector<8x128xf32>
    %63 = arith.addf %51, %62 : vector<8x128xf32>
    %c5 = arith.constant 5 : index
    %64 = memref.load %arg1[%c5] : memref<10xf32, #tpu.memory_space<smem>>
    %65 = vector.broadcast %64 : f32 to vector<8x128xf32>
    %66 = arith.subf %0, %65 : vector<8x128xf32>
    %c5_14 = arith.constant 5 : index
    %67 = memref.load %arg3[%c5_14] : memref<10xf32, #tpu.memory_space<smem>>
    %68 = arith.mulf %66, %66 : vector<8x128xf32>
    %c5_15 = arith.constant 5 : index
    %69 = memref.load %arg2[%c5_15] : memref<10xf32, #tpu.memory_space<smem>>
    %70 = vector.broadcast %69 : f32 to vector<8x128xf32>
    %71 = arith.mulf %68, %70 : vector<8x128xf32>
    %72 = math.exp2 %71 : vector<8x128xf32>
    %73 = vector.broadcast %67 : f32 to vector<8x128xf32>
    %74 = arith.mulf %73, %72 : vector<8x128xf32>
    %75 = arith.addf %63, %74 : vector<8x128xf32>
    %c6 = arith.constant 6 : index
    %76 = memref.load %arg1[%c6] : memref<10xf32, #tpu.memory_space<smem>>
    %77 = vector.broadcast %76 : f32 to vector<8x128xf32>
    %78 = arith.subf %0, %77 : vector<8x128xf32>
    %c6_16 = arith.constant 6 : index
    %79 = memref.load %arg3[%c6_16] : memref<10xf32, #tpu.memory_space<smem>>
    %80 = arith.mulf %78, %78 : vector<8x128xf32>
    %c6_17 = arith.constant 6 : index
    %81 = memref.load %arg2[%c6_17] : memref<10xf32, #tpu.memory_space<smem>>
    %82 = vector.broadcast %81 : f32 to vector<8x128xf32>
    %83 = arith.mulf %80, %82 : vector<8x128xf32>
    %84 = math.exp2 %83 : vector<8x128xf32>
    %85 = vector.broadcast %79 : f32 to vector<8x128xf32>
    %86 = arith.mulf %85, %84 : vector<8x128xf32>
    %87 = arith.addf %75, %86 : vector<8x128xf32>
    %c7 = arith.constant 7 : index
    %88 = memref.load %arg1[%c7] : memref<10xf32, #tpu.memory_space<smem>>
    %89 = vector.broadcast %88 : f32 to vector<8x128xf32>
    %90 = arith.subf %0, %89 : vector<8x128xf32>
    %c7_18 = arith.constant 7 : index
    %91 = memref.load %arg3[%c7_18] : memref<10xf32, #tpu.memory_space<smem>>
    %92 = arith.mulf %90, %90 : vector<8x128xf32>
    %c7_19 = arith.constant 7 : index
    %93 = memref.load %arg2[%c7_19] : memref<10xf32, #tpu.memory_space<smem>>
    %94 = vector.broadcast %93 : f32 to vector<8x128xf32>
    %95 = arith.mulf %92, %94 : vector<8x128xf32>
    %96 = math.exp2 %95 : vector<8x128xf32>
    %97 = vector.broadcast %91 : f32 to vector<8x128xf32>
    %98 = arith.mulf %97, %96 : vector<8x128xf32>
    %99 = arith.addf %87, %98 : vector<8x128xf32>
    %c8 = arith.constant 8 : index
    %100 = memref.load %arg1[%c8] : memref<10xf32, #tpu.memory_space<smem>>
    %101 = vector.broadcast %100 : f32 to vector<8x128xf32>
    %102 = arith.subf %0, %101 : vector<8x128xf32>
    %c8_20 = arith.constant 8 : index
    %103 = memref.load %arg3[%c8_20] : memref<10xf32, #tpu.memory_space<smem>>
    %104 = arith.mulf %102, %102 : vector<8x128xf32>
    %c8_21 = arith.constant 8 : index
    %105 = memref.load %arg2[%c8_21] : memref<10xf32, #tpu.memory_space<smem>>
    %106 = vector.broadcast %105 : f32 to vector<8x128xf32>
    %107 = arith.mulf %104, %106 : vector<8x128xf32>
    %108 = math.exp2 %107 : vector<8x128xf32>
    %109 = vector.broadcast %103 : f32 to vector<8x128xf32>
    %110 = arith.mulf %109, %108 : vector<8x128xf32>
    %111 = arith.addf %99, %110 : vector<8x128xf32>
    %c9 = arith.constant 9 : index
    %112 = memref.load %arg1[%c9] : memref<10xf32, #tpu.memory_space<smem>>
    %113 = vector.broadcast %112 : f32 to vector<8x128xf32>
    %114 = arith.subf %0, %113 : vector<8x128xf32>
    %c9_22 = arith.constant 9 : index
    %115 = memref.load %arg3[%c9_22] : memref<10xf32, #tpu.memory_space<smem>>
    %116 = arith.mulf %114, %114 : vector<8x128xf32>
    %c9_23 = arith.constant 9 : index
    %117 = memref.load %arg2[%c9_23] : memref<10xf32, #tpu.memory_space<smem>>
    %118 = vector.broadcast %117 : f32 to vector<8x128xf32>
    %119 = arith.mulf %116, %118 : vector<8x128xf32>
    %120 = math.exp2 %119 : vector<8x128xf32>
    %121 = vector.broadcast %115 : f32 to vector<8x128xf32>
    %122 = arith.mulf %121, %120 : vector<8x128xf32>
    %123 = arith.addf %111, %122 : vector<8x128xf32>
    %c0_24 = arith.constant 0 : index
    %c0_25 = arith.constant 0 : index
    %124 = vector.load %arg6[%c0_24, %c0_25] : memref<8x128xf32, #tpu.memory_space<vmem>>, vector<8x128xf32>
    tpu.vector_store %arg6[%c0_24, %c0_25], %123 {strides = array<i32>} : memref<8x128xf32, #tpu.memory_space<vmem>>, vector<8x128xf32>,
    return
  }
  func.func @transform_0(%arg0: i32) -> i32 {
    %c0_i32 = arith.constant 0 : i32
    %c0_i32_0 = arith.constant 0 : i32
    return %c0_i32 : i32
  }
  func.func @transform_1(%arg0: i32) -> i32 {
    %c0_i32 = arith.constant 0 : i32
    %c0_i32_0 = arith.constant 0 : i32
    return %c0_i32 : i32
  }
  func.func @transform_2(%arg0: i32) -> i32 {
    %c0_i32 = arith.constant 0 : i32
    %c0_i32_0 = arith.constant 0 : i32
    return %c0_i32 : i32
  }
  func.func @transform_3(%arg0: i32) -> (i32, i32) {
    %c0_i32 = arith.constant 0 : i32
    %c0_i32_0 = arith.constant 0 : i32
    %c0_i32_1 = arith.constant 0 : i32
    return %c0_i32, %c0_i32_0 : i32, i32
  }
  func.func @transform_4(%arg0: i32) -> (i32, i32) {
    %c0_i32 = arith.constant 0 : i32
    %c0_i32_0 = arith.constant 0 : i32
    return %arg0, %c0_i32 : i32, i32
  }
  func.func @transform_5(%arg0: i32) -> (i32, i32) {
    %c0_i32 = arith.constant 0 : i32
    %c0_i32_0 = arith.constant 0 : i32
    return %arg0, %c0_i32 : i32, i32
  }
}

</mosaic_0001>

<bundles_post_ra>
// kernel: tile.9
= control target key start
LH: loop header
LB: loop body
LE: loop exit
PB: predicated region body
PF: predicated region fallthrough
CT: control target
= control target key end

     0   :  { %s69_s10 = smov 112   ;;  %s70_s11 = smov 80   ;;  %vm3_vm0 = vcmask 130048   ;;  %vm9_vm1 = vcmask 1048448   ;;  %vm15_vm2 = vcmask 917248   ;;  %vm21_vm3 = vcmask 786048   ;;  %s113_s0 = inlined_call_operand.vmem [shape: f32[8,16], index: 0, kind: input, shape index: {}]   ;;  %s114_s1 = inlined_call_operand.vmem [shape: f32[1,128], index: 1, kind: output, shape index: {}]  }
   0x1   :  { %v55_v0 = vld [vmem:[%s113_s0 + $0x7] sm:$0x1]   ;;  %v57_v1 = vld [vmem:[%s113_s0 + $0x5] sm:$0x1]   ;;  %v56_v2 = vld [vmem:[%s113_s0 + $0x6] sm:$0x1]  }
   0x2   :  { %7 = vrot.lane.b32.xlu0 %v55_v0, %s69_s10  ;;  %19 = vrot.lane.b32.xlu1 %v57_v1, %s70_s11  ;;  %v58_v3 = vld [vmem:[%s113_s0 + $0x4] sm:$0x1]   ;;  %v2_v4 = vld [vmem:[%s113_s0] sm:$0x1]   ;;  %s71_s18 = smov 96   ;;  %s72_s19 = smov 64  }
   0x3   :  { %4 = vst.msk [vmem:[#allocation0] sm:$0x1] %vm3_vm0, %v2_v4   ;;  %v59_v5 = vld [vmem:[%s113_s0 + $0x3] sm:$0x1]   ;;  %v60_v6 = vld [vmem:[%s113_s0 + $0x2] sm:$0x1]  }
   0x4   :  { %s73_s24 = smov 48   ;;  %s74_s25 = smov 32   ;;  %v61_v7 = vld [vmem:[%s113_s0 + $0x1] sm:$0x1]   ;;  %vm27_vm4 = vcmask 654848   ;;  %vm33_vm5 = vcmask 523648  }
   0x5   :  { %s75_s0 = smov 16   ;;  %vm39_vm6 = vcmask 392448   ;;  %vm45_vm7 = vcmask 261248  }
   0x6   :  { %13 = vrot.lane.b32.xlu0 %v56_v2, %s71_s18  ;;  %25 = vrot.lane.b32.xlu1 %v58_v3, %s72_s19 }
   0xa   :  { %31 = vrot.lane.b32.xlu0 %v59_v5, %s73_s24  ;;  %37 = vrot.lane.b32.xlu1 %v60_v6, %s74_s25 }
   0xe   :  { %43 = vrot.lane.b32.xlu0 %v61_v7, %s75_s0 }
  0x74   :  { %v8_v8 = vpop.permute.xlu0 %7   ;;  %v20_v9 = vpop.permute.xlu1 %19  }
  0x75   :  { %10 = vst.msk [vmem:[#allocation0] sm:$0x1] %vm9_vm1, %v8_v8  }
  0x78   :  { %v14_v10 = vpop.permute.xlu0 %13   ;;  %v26_v11 = vpop.permute.xlu1 %25  }
  0x79   :  { %16 = vst.msk [vmem:[#allocation0] sm:$0x1] %vm15_vm2, %v14_v10  }
  0x7a   :  { %22 = vst.msk [vmem:[#allocation0] sm:$0x1] %vm21_vm3, %v20_v9  }
  0x7b   :  { %28 = vst.msk [vmem:[#allocation0] sm:$0x1] %vm27_vm4, %v26_v11  }
  0x7c   :  { %v32_v12 = vpop.permute.xlu0 %31   ;;  %v38_v13 = vpop.permute.xlu1 %37  }
  0x7d   :  { %34 = vst.msk [vmem:[#allocation0] sm:$0x1] %vm33_vm5, %v32_v12  }
  0x7e   :  { %40 = vst.msk [vmem:[#allocation0] sm:$0x1] %vm39_vm6, %v38_v13  }
  0x80   :  { %v44_v14 = vpop.permute.xlu0 %43  }
  0x81   :  { %46 = vst.msk [vmem:[#allocation0] sm:$0x1] %vm45_vm7, %v44_v14  }
  0x88   :  { %v51_v15 = vld [vmem:[#allocation0] sm:$0x1] }
  0x89   :  { %54 = vst [vmem:[%s114_s1] sm:$0x1] %v51_v15 }

// kernel: tile.8
= control target key start
LH: loop header
LB: loop body
LE: loop exit
PB: predicated region body
PF: predicated region fallthrough
CT: control target
= control target key end

     0   :  { %s22_s0 = inlined_call_operand.vmem [shape: f32[16], index: 0, kind: input, shape index: {}]   ;;  %s23_s1 = inlined_call_operand.vmem [shape: f32[8,16], index: 1, kind: output, shape index: {}]  }
   0x1   :  { %v4_v0 = vld [vmem:[%s22_s0] ss:$0 sm:$0xff] }
   0x2   :  { %5 = vst [vmem:[%s23_s1] sm:$0xff] %v4_v0 }

// kernel: kan_layer_forward.1
= control target key start
LH: loop header
LB: loop body
LE: loop exit
PB: predicated region body
PF: predicated region fallthrough
CT: control target
= control target key end

     0   :  { %10 = vsyncpa [#allocation3], 0  ;;  %s372_s0 = inlined_call_operand.vmem [shape: f32[10], index: 0, kind: input, shape index: {}]   ;;  %s373_s1 = inlined_call_operand.vmem [shape: f32[10], index: 1, kind: input, shape index: {}]   ;;  %s374_s2 = inlined_call_operand.vmem [shape: f32[10], index: 2, kind: input, shape index: {}]   ;;  %s375_s3 = inlined_call_operand.vmem [shape: f32[1,128], index: 3, kind: input, shape index: {}]   ;;  %s376_s4 = inlined_call_operand.vmem [shape: f32[8,128], index: 4, kind: input, shape index: {}]   ;;  %s377_s5 = inlined_call_operand.vmem [shape: f32[8,128], index: 5, kind: output, shape index: {}]  }
   0x1   :  { %11 = vsyncpa [#allocation5], 0  ;;  %s28_s20 = sshll.u32 %s373_s1, 4  ;;  %s18_s23 = sshll.u32 %s372_s0, 4  ;;  %s29_s20 = int_to_ptr.vmem [resolvable:$true] %s28_s20  ;;  %s19_s23 = int_to_ptr.vmem [resolvable:$true] %s18_s23 }
   0x2   :  { %s242_s24 = scalar_lea.vmem %s29_s20, 16  ;;  %p247_p1 = scmp.lt.s32.totalorder %s29_s20, %s29_s20 }
   0x3   :  { %p243_p0 = scmp.ne.s32.totalorder %s29_s20, %s242_s24  ;;  %p248_p2 = scmp.lt.s32.totalorder %s242_s24, %s242_s24 }
   0x5   :  { %p249_p3 = por %p248_p2, %p247_p1 }
   0x7   :  { %p250_p4 = pnand %p249_p3, %p243_p0 }
   0x9   :  { %253 = shalt.err (!%p250_p4)
}
   0xa   :  { %s282_s25 = smov [#allocation4]   ;;  %s254_s26 = scalar_lea.vmem %s19_s23, 16 }
   0xb   :  { %31 = dma.vmem_to_smem %s29_s20, 16, %s282_s25, [#allocation5]  }
   0xc   :  { %p255_p5 = scmp.ne.s32.totalorder %s19_s23, %s254_s26  ;;  %p259_p6 = scmp.lt.s32.totalorder %s19_s23, %s19_s23 }
   0xd   :  { %p260_p7 = scmp.lt.s32.totalorder %s254_s26, %s254_s26 }
   0xf   :  { %p261_p8 = por %p260_p7, %p259_p6 }
  0x11   :  { %p262_p9 = pnand %p261_p8, %p255_p5 }
  0x13   :  { %265 = shalt.err (!%p262_p9)
}
  0x14   :  { %s283_s1 = smov [#allocation2]   ;;  %s38_s28 = sshll.u32 %s374_s2, 4  ;;  %s39_s28 = int_to_ptr.vmem [resolvable:$true] %s38_s28 }
  0x15   :  { %21 = dma.vmem_to_smem %s19_s23, 16, %s283_s1, [#allocation3]  }
  0x16   :  { %s266_s29 = scalar_lea.vmem %s39_s28, 16  ;;  %p271_p11 = scmp.lt.s32.totalorder %s39_s28, %s39_s28 }
  0x17   :  { %p267_p10 = scmp.ne.s32.totalorder %s39_s28, %s266_s29  ;;  %p272_p12 = scmp.lt.s32.totalorder %s266_s29, %s266_s29 }
  0x19   :  { %p273_p13 = por %p272_p12, %p271_p11 }
  0x1b   :  { %p274_p0 = pnand %p273_p13, %p267_p10 }
  0x1d   :  { %277 = shalt.err (!%p274_p0)
}
  0x1e   :  { %s284_s30 = smov [#allocation6]  }
  0x1f   :  { %41 = dma.vmem_to_smem %s39_s28, 16, %s284_s30, [#allocation5]  }
  0x20   :  { %278 = dma.done.wait [#allocation3], 16  }
  0x21   :  { %279 = vsyncadd [#allocation3], 4294967280 }
  0x22   :  { %280 = dma.done.wait [#allocation5], 32  }
  0x23   :  { %281 = vsyncadd [#allocation5], 4294967264 }
  0x24   :  { %55 = sfence }
  0x25   :  { %s64_s6 = sld [smem:[#allocation2]]  ;;  %v327_v0 = vld [vmem:[%s376_s4] sm:$0xff] }
  0x26   :  { %s69_s7 = sld [smem:[#allocation4]]  ;;  %v191_v34 = vld [vmem:[%s375_s3] ss:$0 sm:$0xff] }
  0x27   :  { %s192_s8 = sld [smem:[#allocation2 + $0x1]] }
  0x28   :  { %s194_s10 = sld [smem:[#allocation4 + $0x1]] }
  0x29   :  { %s195_s11 = sld [smem:[#allocation2 + $0x2]] }
  0x2a   :  { %s197_s12 = sld [smem:[#allocation4 + $0x2]] }
  0x2b   :  { %v65_v1 = vstv %s64_s6  ;;  %s198_s13 = sld [smem:[#allocation2 + $0x3]] }
  0x2c   :  { %v66_v2 = vsub.f32 %v327_v0, %v65_v1  ;;  %v70_v3 = vstv %s69_s7  ;;  %s200_s14 = sld [smem:[#allocation4 + $0x3]] }
  0x2d   :  { %v77_v5 = vstv %s192_s8  ;;  %s201_s15 = sld [smem:[#allocation2 + $0x4]] }
  0x2e   :  { %v68_v4 = vmul.f32 %v66_v2, %v66_v2  ;;  %v78_v6 = vsub.f32 %v327_v0, %v77_v5  ;;  %v82_v8 = vstv %s194_s10  ;;  %s203_s4 = sld [smem:[#allocation4 + $0x4]] }
  0x2f   :  { %v89_v10 = vstv %s195_s11  ;;  %s204_s16 = sld [smem:[#allocation2 + $0x5]] }
  0x30   :  { %v71_v7 = vmul.f32 %v70_v3, %v68_v4  ;;  %v80_v9 = vmul.f32 %v78_v6, %v78_v6  ;;  %v90_v11 = vsub.f32 %v327_v0, %v89_v10  ;;  %v94_v13 = vstv %s197_s12  ;;  %s332_s17 = sld [smem:[#allocation6]] }
  0x31   :  { %v101_v15 = vstv %s198_s13  ;;  %s206_s18 = sld [smem:[#allocation4 + $0x5]] }
  0x32   :  { %222 = vpow2.f32 %v71_v7  ;;  %v83_v12 = vmul.f32 %v82_v8, %v80_v9  ;;  %v92_v14 = vmul.f32 %v90_v11, %v90_v11  ;;  %v102_v16 = vsub.f32 %v327_v0, %v101_v15  ;;  %s207_s19 = sld [smem:[#allocation2 + $0x6]] }
  0x33   :  { %v106_v18 = vstv %s200_s14  ;;  %v113_v20 = vstv %s201_s15  ;;  %s335_s20 = sld [smem:[#allocation6 + $0x1]] }
  0x34   :  { %224 = vpow2.f32 %v83_v12  ;;  %v95_v17 = vmul.f32 %v94_v13, %v92_v14  ;;  %v104_v19 = vmul.f32 %v102_v16, %v102_v16  ;;  %v114_v21 = vsub.f32 %v327_v0, %v113_v20  ;;  %s338_s21 = sld [smem:[#allocation4 + $0x6]] }
  0x35   :  { %v118_v23 = vstv %s203_s4  ;;  %v125_v25 = vstv %s204_s16  ;;  %s210_s22 = sld [smem:[#allocation2 + $0x7]] }
  0x36   :  { %226 = vpow2.f32 %v95_v17  ;;  %v107_v22 = vmul.f32 %v106_v18, %v104_v19  ;;  %v116_v24 = vmul.f32 %v114_v21, %v114_v21  ;;  %s340_s23 = sld [smem:[#allocation6 + $0x2]]  ;;  %v126_v26 = vsub.f32 %v327_v0, %v125_v25 }
  0x37   :  { %v130_v28 = vstv %s206_s18  ;;  %s343_s24 = sld [smem:[#allocation4 + $0x7]]  ;;  %v73_v29 = vstv %s332_s17 }
  0x38   :  { %228 = vpow2.f32 %v107_v22  ;;  %v119_v27 = vmul.f32 %v118_v23, %v116_v24  ;;  %v128_v30 = vmul.f32 %v126_v26, %v126_v26  ;;  %v137_v31 = vstv %s207_s19  ;;  %s213_s25 = sld [smem:[#allocation2 + $0x8]] }
  0x39   :  { %s346_s26 = sld [smem:[#allocation6 + $0x3]]  ;;  %v138_v32 = vsub.f32 %v327_v0, %v137_v31  ;;  %v85_v38 = vstv %s335_s20 }
  0x3a   :  { %230 = vpow2.f32 %v119_v27  ;;  %v131_v35 = vmul.f32 %v130_v28, %v128_v30  ;;  %v142_v36 = vstv %s338_s21  ;;  %s353_s27 = sld [smem:[#allocation4 + $0x8]] }
  0x3b   :  { %v140_v39 = vmul.f32 %v138_v32, %v138_v32  ;;  %v149_v40 = vstv %s210_s22  ;;  %s216_s28 = sld [smem:[#allocation2 + $0x9]] }
  0x3c   :  { %s356_s29 = sld [smem:[#allocation6 + $0x4]]  ;;  %232 = vpow2.f32 %v131_v35  ;;  %v150_v41 = vsub.f32 %v327_v0, %v149_v40  ;;  %v97_v47 = vstv %s340_s23 }
  0x3d   :  { %v143_v44 = vmul.f32 %v142_v36, %v140_v39  ;;  %v154_v45 = vstv %s343_s24  ;;  %s218_s3 = sld [smem:[#allocation4 + $0x9]] }
  0x3e   :  { %v152_v48 = vmul.f32 %v150_v41, %v150_v41  ;;  %v161_v49 = vstv %s213_s25  ;;  %s361_s30 = sld [smem:[#allocation6 + $0x5]] }
  0x3f   :  { %v223_v33 = vpop.eup %222  ;;  %234 = vpow2.f32 %v143_v44  ;;  %v162_v50 = vsub.f32 %v327_v0, %v161_v49  ;;  %v109_v56 = vstv %s346_s26  ;;  %s208_s6 = sld [smem:[#allocation6 + $0x6]] }
  0x40   :  { %v74_v37 = vmul.f32 %v223_v33, %v73_v29  ;;  %v155_v53 = vmul.f32 %v154_v45, %v152_v48  ;;  %v166_v54 = vstv %s353_s27  ;;  %s211_s7 = sld [smem:[#allocation6 + $0x7]] }
  0x41   :  { %v225_v42 = vpop.eup %224  ;;  %v164_v57 = vmul.f32 %v162_v50, %v162_v50  ;;  %v173_v58 = vstv %s216_s28  ;;  %s214_s8 = sld [smem:[#allocation6 + $0x8]] }
  0x42   :  { %v75_v43 = vadd.f32 %v191_v34, %v74_v37  ;;  %v86_v46 = vmul.f32 %v225_v42, %v85_v38  ;;  %236 = vpow2.f32 %v155_v53  ;;  %v174_v59 = vsub.f32 %v327_v0, %v173_v58  ;;  %s217_s9 = sld [smem:[#allocation6 + $0x9]] }
  0x43   :  { %v227_v51 = vpop.eup %226  ;;  %v167_v62 = vmul.f32 %v166_v54, %v164_v57  ;;  %v178_v63 = vstv %s218_s3  ;;  %v121_v2 = vstv %s356_s29 }
  0x44   :  { %v87_v52 = vadd.f32 %v86_v46, %v75_v43  ;;  %v98_v55 = vmul.f32 %v227_v51, %v97_v47  ;;  %v176_v3 = vmul.f32 %v174_v59, %v174_v59  ;;  %v133_v8 = vstv %s361_s30 }
  0x45   :  { %v229_v60 = vpop.eup %228  ;;  %238 = vpow2.f32 %v167_v62  ;;  %v145_v0 = vstv %s208_s6 }
  0x46   :  { %v99_v61 = vadd.f32 %v98_v55, %v87_v52  ;;  %v110_v1 = vmul.f32 %v229_v60, %v109_v56  ;;  %v179_v6 = vmul.f32 %v178_v63, %v176_v3  ;;  %v157_v15 = vstv %s211_s7 }
  0x47   :  { %v231_v4 = vpop.eup %230  ;;  %v169_v19 = vstv %s214_s8 }
  0x48   :  { %v111_v5 = vadd.f32 %v110_v1, %v99_v61  ;;  %v122_v7 = vmul.f32 %v231_v4, %v121_v2  ;;  %240 = vpow2.f32 %v179_v6  ;;  %v181_v23 = vstv %s217_s9 }
  0x49   :  { %v233_v9 = vpop.eup %232 }
  0x4a   :  { %v123_v10 = vadd.f32 %v122_v7, %v111_v5  ;;  %v134_v11 = vmul.f32 %v233_v9, %v133_v8 }
  0x4c   :  { %v235_v12 = vpop.eup %234  ;;  %v135_v13 = vadd.f32 %v134_v11, %v123_v10 }
  0x4d   :  { %v146_v14 = vmul.f32 %v235_v12, %v145_v0 }
  0x4f   :  { %v237_v16 = vpop.eup %236  ;;  %v147_v17 = vadd.f32 %v146_v14, %v135_v13 }
  0x50   :  { %v158_v18 = vmul.f32 %v237_v16, %v157_v15 }
  0x52   :  { %v239_v20 = vpop.eup %238  ;;  %v159_v21 = vadd.f32 %v158_v18, %v147_v17 }
  0x53   :  { %v170_v22 = vmul.f32 %v239_v20, %v169_v19 }
  0x55   :  { %v241_v24 = vpop.eup %240  ;;  %v171_v25 = vadd.f32 %v170_v22, %v159_v21 }
  0x56   :  { %v182_v26 = vmul.f32 %v241_v24, %v181_v23 }
  0x58   :  { %v183_v27 = vadd.f32 %v182_v26, %v171_v25 }
  0x5a   :  { %184 = vst [vmem:[%s377_s5] sm:$0xff] %v183_v27 }
  0x5b   :  { %189 = vsyncpa [#allocation3], 1 }
  0x5c   :  { %190 = vsyncpa [#allocation5], 1 }

</bundles_post_ra>
